<compile_context>
chip_gen: v7x
topology: tpu7x:2x2x1
jax: 0.10.0
libtpu: 0.0.40
codegen_flags: <defaults>
</compile_context>

<pallas_src>
import functools
import math

import jax
import jax.numpy as jnp
import numpy as np
from jax.experimental import pallas as pl
from jax.experimental.pallas import tpu as pltpu


def _mha_kernel(q_ref, k_ref, v_ref, mask_ref,
                wqkv_ref, bqkv_ref, wo_ref, bo_ref,
                out_ref, *, h: int):
    # Block shapes:
    #   q_ref    : (1, tq, D)        k_ref/v_ref : (1, S, D)
    #   mask_ref : (1, 1, tq, S)
    #   wqkv_ref : (3, h, D, d_k)    bqkv_ref    : (3, h, 1, d_k)
    #   wo_ref   : (h, d_k, D)       bo_ref      : (1, D)
    #   out_ref  : (1, tq, D)
    cdt = jnp.bfloat16
    f32 = jnp.float32

    q_in = q_ref[0].astype(cdt)          # (tq, D)
    k_in = k_ref[0].astype(cdt)          # (S, D)
    v_in = v_ref[0].astype(cdt)          # (S, D)

    wq_h = wqkv_ref[0]                   # (h, D, d_k) bf16 (scale pre-folded)
    wk_h = wqkv_ref[1]
    wv_h = wqkv_ref[2]
    bq_h = bqkv_ref[0]                   # (h, 1, d_k) f32 (scale pre-folded)
    bk_h = bqkv_ref[1]
    bv_h = bqkv_ref[2]

    # Head-batched projections: output is already in (head, row, d_k) layout,
    # so no in-kernel lane slicing / reshape of activations is needed.
    proj_dims = (((2,), (1,)), ((0,), (0,)))
    q_b = jnp.broadcast_to(q_in[None], (h,) + q_in.shape)   # (h, tq, D)
    k_b = jnp.broadcast_to(k_in[None], (h,) + k_in.shape)   # (h, S, D)
    v_b = jnp.broadcast_to(v_in[None], (h,) + v_in.shape)   # (h, S, D)

    q_h = (jax.lax.dot_general(q_b, wq_h, proj_dims,
                               preferred_element_type=f32) + bq_h).astype(cdt)
    k_h = (jax.lax.dot_general(k_b, wk_h, proj_dims,
                               preferred_element_type=f32) + bk_h).astype(cdt)
    v_h = (jax.lax.dot_general(v_b, wv_h, proj_dims,
                               preferred_element_type=f32) + bv_h).astype(cdt)

    # Attention scores for all heads in one batched MXU contraction.
    scores = jax.lax.dot_general(q_h, k_h, (((2,), (2,)), ((0,), (0,))),
                                 preferred_element_type=f32)      # (h, tq, S)

    # Mask -> additive bias, computed once and broadcast over heads.
    bias = jnp.where(mask_ref[0, 0] == 0, f32(-1e9), f32(0.0))    # (tq, S)
    scores = scores + bias[None, :, :]

    # Softmax along keys, f32 math, EUP reciprocal.
    m = jnp.max(scores, axis=-1, keepdims=True)
    p = jnp.exp(scores - m)
    denom = jnp.sum(p, axis=-1, keepdims=True)
    attn = p * pl.reciprocal(denom, approx=True)
    # TODO(synk): dropout on attention weights is identity in eval mode; the
    #             module's self.attention_score caching is not materialized.

    # Context per head: (h, tq, d_k)
    ctx = jax.lax.dot_general(attn.astype(cdt), v_h,
                              (((2,), (1,)), ((0,), (0,))),
                              preferred_element_type=f32)

    # Output projection: per-head weight slabs + sum over heads.  This is
    # exactly concat(heads) @ w_o without any lane concat / relayout.
    partial = jax.lax.dot_general(ctx.astype(cdt), wo_ref[...],
                                  (((2,), (1,)), ((0,), (0,))),
                                  preferred_element_type=f32)     # (h, tq, D)
    out = jnp.sum(partial, axis=0) + bo_ref[...]                  # (tq, D)
    out_ref[0] = out.astype(out_ref.dtype)


def multihead_attention(q, k, v, mask, params, *, h: int, q_tile=None):
    """q, k, v: (B, S, D) float32; mask: (B, 1, S, S) int32 (0 -> masked)."""
    B, S, D = q.shape
    assert D % h == 0
    d_k = D // h
    wq, bq, wk, bk, wv, bv, wo, bo = params

    # ---- wrapper-side weight re-arrangement (plain JAX, free) ----
    scale = 1.0 / math.sqrt(d_k)

    def split_heads_w(w):                       # (D, D) -> (h, D, d_k)
        return w.reshape(D, h, d_k).transpose(1, 0, 2)

    wqkv = jnp.stack([split_heads_w(wq) * scale,        # scale folded into q
                      split_heads_w(wk),
                      split_heads_w(wv)]).astype(jnp.bfloat16)   # (3, h, D, d_k)
    bqkv = jnp.stack([(bq * scale).reshape(h, 1, d_k),
                      bk.reshape(h, 1, d_k),
                      bv.reshape(h, 1, d_k)]).astype(jnp.float32)  # (3, h, 1, d_k)
    wo_h = wo.reshape(h, d_k, D).astype(jnp.bfloat16)            # (h, d_k, D)
    bo_2d = bo.reshape(1, D).astype(jnp.float32)                 # (1, D)

    # ---- query tiling ----
    if q_tile is None:
        q_tile = 128 if (S % 128 == 0) else S
    assert S % q_tile == 0
    n_q = S // q_tile
    grid = (B, n_q)

    q_spec = pl.BlockSpec((1, q_tile, D), lambda b, qi: (b, qi, 0))
    kv_spec = pl.BlockSpec((1, S, D), lambda b, qi: (b, 0, 0))
    mask_spec = pl.BlockSpec((1, 1, q_tile, S), lambda b, qi: (b, 0, qi, 0))
    wqkv_spec = pl.BlockSpec((3, h, D, d_k), lambda b, qi: (0, 0, 0, 0))
    bqkv_spec = pl.BlockSpec((3, h, 1, d_k), lambda b, qi: (0, 0, 0, 0))
    wo_spec = pl.BlockSpec((h, d_k, D), lambda b, qi: (0, 0, 0))
    bo_spec = pl.BlockSpec((1, D), lambda b, qi: (0, 0))
    out_spec = pl.BlockSpec((1, q_tile, D), lambda b, qi: (b, qi, 0))

    kernel = functools.partial(_mha_kernel, h=h)

    return pl.pallas_call(
        kernel,
        out_shape=jax.ShapeDtypeStruct((B, S, D), jnp.float32),
        grid_spec=pltpu.PrefetchScalarGridSpec(
            num_scalar_prefetch=0,
            grid=grid,
            in_specs=[q_spec, kv_spec, kv_spec, mask_spec,
                      wqkv_spec, bqkv_spec, wo_spec, bo_spec],
            out_specs=out_spec),
        compiler_params=pltpu.CompilerParams(
            dimension_semantics=("parallel", "parallel")),
    )(q, k, v, mask, wqkv, bqkv, wo_h, bo_2d)


def _reference(q, k, v, mask, params, h):
    """Pure-JAX f32 reference mirroring the PyTorch module (dropout=eval)."""
    B, S, D = q.shape
    d_k = D // h
    wq, bq, wk, bk, wv, bv, wo, bo = params
    query = q @ wq + bq
    key = k @ wk + bk
    value = v @ wv + bv
    query = query.reshape(B, S, h, d_k).transpose(0, 2, 1, 3)
    key = key.reshape(B, S, h, d_k).transpose(0, 2, 1, 3)
    value = value.reshape(B, S, h, d_k).transpose(0, 2, 1, 3)
    scores = jnp.einsum("bhqd,bhkd->bhqk", query, key) / math.sqrt(d_k)
    scores = jnp.where(mask == 0, -1e9, scores)
    attn = jax.nn.softmax(scores, axis=-1)
    x = jnp.einsum("bhqk,bhkd->bhqd", attn, value)
    x = x.transpose(0, 2, 1, 3).reshape(B, S, D)
    return x @ wo + bo


if __name__ == "__main__":
    B, S, D, H = 2, 8, 32, 4

    key = jax.random.PRNGKey(0)
    ks = jax.random.split(key, 12)

    # Deterministic parameter init (weights as (in, out) so forward is x @ W + b).
    scale = 1.0 / math.sqrt(D)
    wq = jax.random.uniform(ks[0], (D, D), jnp.float32, -scale, scale)
    bq = jax.random.uniform(ks[1], (D,), jnp.float32, -scale, scale)
    wk = jax.random.uniform(ks[2], (D, D), jnp.float32, -scale, scale)
    bk = jax.random.uniform(ks[3], (D,), jnp.float32, -scale, scale)
    wv = jax.random.uniform(ks[4], (D, D), jnp.float32, -scale, scale)
    bv = jax.random.uniform(ks[5], (D,), jnp.float32, -scale, scale)
    wo = jax.random.uniform(ks[6], (D, D), jnp.float32, -scale, scale)
    bo = jax.random.uniform(ks[7], (D,), jnp.float32, -scale, scale)
    params = (wq, bq, wk, bk, wv, bv, wo, bo)

    # Inputs: q, k, v (B, S, D); causal-style mask (B, 1, S, S) with 0/1 entries.
    q = jax.random.normal(ks[8], (B, S, D), jnp.float32)
    k = jax.random.normal(ks[9], (B, S, D), jnp.float32)
    v = jax.random.normal(ks[10], (B, S, D), jnp.float32)
    mask = jnp.tril(jnp.ones((S, S), jnp.int32))[None, None, :, :]
    mask = jnp.broadcast_to(mask, (B, 1, S, S))

    out = multihead_attention(q, k, v, mask, params, h=H)
    out = jax.block_until_ready(out)

    ref = _reference(q, k, v, mask, params, H)
    # Tolerance reflects bf16 MXU inputs (f32 accumulation, f32 softmax).
    assert np.allclose(np.asarray(out), np.asarray(ref), atol=5e-2, rtol=5e-2), \
        "Pallas output does not match reference"

    print("KERNEL_OK")
</pallas_src>

<mosaic_0001>
module attributes {stable_mosaic.version = 11 : i64} {
  func.func @_mha_kernel(%arg0: i32, %arg1: i32, %arg2: memref<1x8x32xf32, #tpu.memory_space<vmem>>, %arg3: memref<1x8x32xf32, #tpu.memory_space<vmem>>, %arg4: memref<1x8x32xf32, #tpu.memory_space<vmem>>, %arg5: memref<1x1x8x8xi32, #tpu.memory_space<vmem>>, %arg6: memref<3x4x32x8xbf16, #tpu.memory_space<vmem>>, %arg7: memref<3x4x1x8xf32, #tpu.memory_space<vmem>>, %arg8: memref<4x8x32xbf16, #tpu.memory_space<vmem>>, %arg9: memref<1x32xf32, #tpu.memory_space<vmem>>, %arg10: memref<1x8x32xf32, #tpu.memory_space<vmem>>) attributes {dimension_semantics = [#tpu.dimension_semantics<parallel>, #tpu.dimension_semantics<parallel>], iteration_bounds = array<i64: 2, 1>, scalar_prefetch = 0 : i64, scratch_operands = 0 : i64, tpu.core_type = #tpu.core_type<tc>, window_params = [{transform_indices = @transform_0, window_bounds = array<i64: 1, 8, 32>}, {transform_indices = @transform_1, window_bounds = array<i64: 1, 8, 32>}, {transform_indices = @transform_2, window_bounds = array<i64: 1, 8, 32>}, {transform_indices = @transform_3, window_bounds = array<i64: 1, 1, 8, 8>}, {pipeline_mode = #tpu.pipeline_mode<synchronous>, transform_indices = @transform_4, window_bounds = array<i64: 3, 4, 32, 8>}, {pipeline_mode = #tpu.pipeline_mode<synchronous>, transform_indices = @transform_5, window_bounds = array<i64: 3, 4, 1, 8>}, {pipeline_mode = #tpu.pipeline_mode<synchronous>, transform_indices = @transform_6, window_bounds = array<i64: 4, 8, 32>}, {pipeline_mode = #tpu.pipeline_mode<synchronous>, transform_indices = @transform_7, window_bounds = array<i64: 1, 32>}, {transform_indices = @transform_8, window_bounds = array<i64: 1, 8, 32>}]} {
    %c0 = arith.constant 0 : index
    %c0_0 = arith.constant 0 : index
    %c0_1 = arith.constant 0 : index
    %0 = vector.load %arg2[%c0, %c0_0, %c0_1] : memref<1x8x32xf32, #tpu.memory_space<vmem>>, vector<1x8x32xf32>
    %1 = vector.shape_cast %0 : vector<1x8x32xf32> to vector<8x32xf32>
    %2 = arith.truncf %1 : vector<8x32xf32> to vector<8x32xbf16>
    %c0_2 = arith.constant 0 : index
    %c0_3 = arith.constant 0 : index
    %c0_4 = arith.constant 0 : index
    %3 = vector.load %arg3[%c0_2, %c0_3, %c0_4] : memref<1x8x32xf32, #tpu.memory_space<vmem>>, vector<1x8x32xf32>
    %4 = vector.shape_cast %3 : vector<1x8x32xf32> to vector<8x32xf32>
    %5 = arith.truncf %4 : vector<8x32xf32> to vector<8x32xbf16>
    %c0_5 = arith.constant 0 : index
    %c0_6 = arith.constant 0 : index
    %c0_7 = arith.constant 0 : index
    %6 = vector.load %arg4[%c0_5, %c0_6, %c0_7] : memref<1x8x32xf32, #tpu.memory_space<vmem>>, vector<1x8x32xf32>
    %7 = vector.shape_cast %6 : vector<1x8x32xf32> to vector<8x32xf32>
    %8 = arith.truncf %7 : vector<8x32xf32> to vector<8x32xbf16>
    %c0_8 = arith.constant 0 : index
    %c0_9 = arith.constant 0 : index
    %c0_10 = arith.constant 0 : index
    %c0_11 = arith.constant 0 : index
    %9 = vector.load %arg6[%c0_8, %c0_9, %c0_10, %c0_11] : memref<3x4x32x8xbf16, #tpu.memory_space<vmem>>, vector<1x4x32x8xbf16>
    %10 = vector.shape_cast %9 : vector<1x4x32x8xbf16> to vector<4x32x8xbf16>
    %c1 = arith.constant 1 : index
    %c0_12 = arith.constant 0 : index
    %c0_13 = arith.constant 0 : index
    %c0_14 = arith.constant 0 : index
    %11 = vector.load %arg6[%c1, %c0_12, %c0_13, %c0_14] : memref<3x4x32x8xbf16, #tpu.memory_space<vmem>>, vector<1x4x32x8xbf16>
    %12 = vector.shape_cast %11 : vector<1x4x32x8xbf16> to vector<4x32x8xbf16>
    %c2 = arith.constant 2 : index
    %c0_15 = arith.constant 0 : index
    %c0_16 = arith.constant 0 : index
    %c0_17 = arith.constant 0 : index
    %13 = vector.load %arg6[%c2, %c0_15, %c0_16, %c0_17] : memref<3x4x32x8xbf16, #tpu.memory_space<vmem>>, vector<1x4x32x8xbf16>
    %14 = vector.shape_cast %13 : vector<1x4x32x8xbf16> to vector<4x32x8xbf16>
    %c0_18 = arith.constant 0 : index
    %c0_19 = arith.constant 0 : index
    %c0_20 = arith.constant 0 : index
    %c0_21 = arith.constant 0 : index
    %15 = vector.load %arg7[%c0_18, %c0_19, %c0_20, %c0_21] : memref<3x4x1x8xf32, #tpu.memory_space<vmem>>, vector<1x4x1x8xf32>
    %16 = vector.shape_cast %15 : vector<1x4x1x8xf32> to vector<4x1x8xf32>
    %c1_22 = arith.constant 1 : index
    %c0_23 = arith.constant 0 : index
    %c0_24 = arith.constant 0 : index
    %c0_25 = arith.constant 0 : index
    %17 = vector.load %arg7[%c1_22, %c0_23, %c0_24, %c0_25] : memref<3x4x1x8xf32, #tpu.memory_space<vmem>>, vector<1x4x1x8xf32>
    %18 = vector.shape_cast %17 : vector<1x4x1x8xf32> to vector<4x1x8xf32>
    %c2_26 = arith.constant 2 : index
    %c0_27 = arith.constant 0 : index
    %c0_28 = arith.constant 0 : index
    %c0_29 = arith.constant 0 : index
    %19 = vector.load %arg7[%c2_26, %c0_27, %c0_28, %c0_29] : memref<3x4x1x8xf32, #tpu.memory_space<vmem>>, vector<1x4x1x8xf32>
    %20 = vector.shape_cast %19 : vector<1x4x1x8xf32> to vector<4x1x8xf32>
    %21 = vector.shape_cast %2 : vector<8x32xbf16> to vector<1x8x32xbf16>
    %22 = vector.shape_cast %21 : vector<1x8x32xbf16> to vector<1x8x32xbf16>
    %23 = vector.broadcast %22 : vector<1x8x32xbf16> to vector<4x8x32xbf16>
    %24 = vector.shape_cast %5 : vector<8x32xbf16> to vector<1x8x32xbf16>
    %25 = vector.shape_cast %24 : vector<1x8x32xbf16> to vector<1x8x32xbf16>
    %26 = vector.broadcast %25 : vector<1x8x32xbf16> to vector<4x8x32xbf16>
    %27 = vector.shape_cast %8 : vector<8x32xbf16> to vector<1x8x32xbf16>
    %28 = vector.shape_cast %27 : vector<1x8x32xbf16> to vector<1x8x32xbf16>
    %29 = vector.broadcast %28 : vector<1x8x32xbf16> to vector<4x8x32xbf16>
    %cst = arith.constant dense<0.000000e+00> : vector<4x8x8xf32>
    %30 = tpu.matmul %23, %10, %cst {dimension_numbers = #tpu.dot_dimension_numbers<[2], [1], [1], [2], [0, 0, 0, 1, 1, 2], [0], [0]>} : vector<4x8x32xbf16>, vector<4x32x8xbf16>, vector<4x8x8xf32> -> vector<4x8x8xf32>
    %31 = vector.broadcast %16 : vector<4x1x8xf32> to vector<4x8x8xf32>
    %32 = arith.addf %30, %31 : vector<4x8x8xf32>
    %33 = arith.truncf %32 : vector<4x8x8xf32> to vector<4x8x8xbf16>
    %cst_30 = arith.constant dense<0.000000e+00> : vector<4x8x8xf32>
    %34 = tpu.matmul %26, %12, %cst_30 {dimension_numbers = #tpu.dot_dimension_numbers<[2], [1], [1], [2], [0, 0, 0, 1, 1, 2], [0], [0]>} : vector<4x8x32xbf16>, vector<4x32x8xbf16>, vector<4x8x8xf32> -> vector<4x8x8xf32>
    %35 = vector.broadcast %18 : vector<4x1x8xf32> to vector<4x8x8xf32>
    %36 = arith.addf %34, %35 : vector<4x8x8xf32>
    %37 = arith.truncf %36 : vector<4x8x8xf32> to vector<4x8x8xbf16>
    %cst_31 = arith.constant dense<0.000000e+00> : vector<4x8x8xf32>
    %38 = tpu.matmul %29, %14, %cst_31 {dimension_numbers = #tpu.dot_dimension_numbers<[2], [1], [1], [2], [0, 0, 0, 1, 1, 2], [0], [0]>} : vector<4x8x32xbf16>, vector<4x32x8xbf16>, vector<4x8x8xf32> -> vector<4x8x8xf32>
    %39 = vector.broadcast %20 : vector<4x1x8xf32> to vector<4x8x8xf32>
    %40 = arith.addf %38, %39 : vector<4x8x8xf32>
    %41 = arith.truncf %40 : vector<4x8x8xf32> to vector<4x8x8xbf16>
    %cst_32 = arith.constant dense<0.000000e+00> : vector<4x8x8xf32>
    %42 = tpu.matmul %33, %37, %cst_32 {dimension_numbers = #tpu.dot_dimension_numbers<[2], [2], [1], [1], [0, 0, 0, 1, 1, 1], [0], [0]>} : vector<4x8x8xbf16>, vector<4x8x8xbf16>, vector<4x8x8xf32> -> vector<4x8x8xf32>
    %c0_33 = arith.constant 0 : index
    %c0_34 = arith.constant 0 : index
    %c0_35 = arith.constant 0 : index
    %c0_36 = arith.constant 0 : index
    %43 = vector.load %arg5[%c0_33, %c0_34, %c0_35, %c0_36] : memref<1x1x8x8xi32, #tpu.memory_space<vmem>>, vector<1x1x8x8xi32>
    %44 = vector.shape_cast %43 : vector<1x1x8x8xi32> to vector<8x8xi32>
    %c0_i32 = arith.constant 0 : i32
    %45 = vector.broadcast %c0_i32 : i32 to vector<8x8xi32>
    %46 = arith.cmpi eq, %44, %45 : vector<8x8xi32>
    %cst_37 = arith.constant -1.000000e+09 : f32
    %cst_38 = arith.constant 0.000000e+00 : f32
    %47 = vector.broadcast %cst_37 : f32 to vector<8x8xf32>
    %48 = vector.broadcast %cst_38 : f32 to vector<8x8xf32>
    %49 = arith.select %46, %47, %48 : vector<8x8xi1>, vector<8x8xf32>
    %50 = vector.shape_cast %49 : vector<8x8xf32> to vector<1x8x8xf32>
    %51 = vector.broadcast %50 : vector<1x8x8xf32> to vector<4x8x8xf32>
    %52 = arith.addf %42, %51 : vector<4x8x8xf32>
    %cst_39 = arith.constant dense<0xFF800000> : vector<4x8xf32>
    %53 = vector.multi_reduction <maximumf>, %52, %cst_39 [2] : vector<4x8x8xf32> to vector<4x8xf32>
    %54 = vector.shape_cast %53 : vector<4x8xf32> to vector<4x8x1xf32>
    %55 = vector.broadcast %54 : vector<4x8x1xf32> to vector<4x8x8xf32>
    %56 = arith.subf %52, %55 : vector<4x8x8xf32>
    %57 = math.exp %56 : vector<4x8x8xf32>
    %cst_40 = arith.constant dense<0.000000e+00> : vector<4x8xf32>
    %58 = vector.multi_reduction <add>, %57, %cst_40 [2] : vector<4x8x8xf32> to vector<4x8xf32>
    %59 = vector.shape_cast %58 : vector<4x8xf32> to vector<4x8x1xf32>
    %60 = tpu.reciprocal %59 {approx = true} : vector<4x8x1xf32> -> vector<4x8x1xf32>
    %61 = vector.broadcast %60 : vector<4x8x1xf32> to vector<4x8x8xf32>
    %62 = arith.mulf %57, %61 : vector<4x8x8xf32>
    %63 = arith.truncf %62 : vector<4x8x8xf32> to vector<4x8x8xbf16>
    %cst_41 = arith.constant dense<0.000000e+00> : vector<4x8x8xf32>
    %64 = tpu.matmul %63, %41, %cst_41 {dimension_numbers = #tpu.dot_dimension_numbers<[2], [1], [1], [2], [0, 0, 0, 1, 1, 2], [0], [0]>} : vector<4x8x8xbf16>, vector<4x8x8xbf16>, vector<4x8x8xf32> -> vector<4x8x8xf32>
    %65 = arith.truncf %64 : vector<4x8x8xf32> to vector<4x8x8xbf16>
    %c0_42 = arith.constant 0 : index
    %c0_43 = arith.constant 0 : index
    %c0_44 = arith.constant 0 : index
    %66 = vector.load %arg8[%c0_42, %c0_43, %c0_44] : memref<4x8x32xbf16, #tpu.memory_space<vmem>>, vector<4x8x32xbf16>
    %cst_45 = arith.constant dense<0.000000e+00> : vector<4x8x32xf32>
    %67 = tpu.matmul %65, %66, %cst_45 {dimension_numbers = #tpu.dot_dimension_numbers<[2], [1], [1], [2], [0, 0, 0, 1, 1, 2], [0], [0]>} : vector<4x8x8xbf16>, vector<4x8x32xbf16>, vector<4x8x32xf32> -> vector<4x8x32xf32>
    %cst_46 = arith.constant dense<0.000000e+00> : vector<8x32xf32>
    %68 = vector.multi_reduction <add>, %67, %cst_46 [0] : vector<4x8x32xf32> to vector<8x32xf32>
    %c0_47 = arith.constant 0 : index
    %c0_48 = arith.constant 0 : index
    %69 = vector.load %arg9[%c0_47, %c0_48] : memref<1x32xf32, #tpu.memory_space<vmem>>, vector<1x32xf32>
    %70 = vector.broadcast %69 : vector<1x32xf32> to vector<8x32xf32>
    %71 = arith.addf %68, %70 : vector<8x32xf32>
    %c0_49 = arith.constant 0 : index
    %c0_50 = arith.constant 0 : index
    %c0_51 = arith.constant 0 : index
    %72 = vector.load %arg10[%c0_49, %c0_50, %c0_51] : memref<1x8x32xf32, #tpu.memory_space<vmem>>, vector<1x8x32xf32>
    %73 = vector.shape_cast %72 : vector<1x8x32xf32> to vector<8x32xf32>
    %74 = vector.shape_cast %71 : vector<8x32xf32> to vector<1x8x32xf32>
    tpu.vector_store %arg10[%c0_49, %c0_50, %c0_51], %74 {strides = array<i32>} : memref<1x8x32xf32, #tpu.memory_space<vmem>>, vector<1x8x32xf32>,
    return
  }
  func.func @transform_0(%arg0: i32, %arg1: i32) -> (i32, i32, i32) {
    %c0_i32 = arith.constant 0 : i32
    %c0_i32_0 = arith.constant 0 : i32
    return %arg0, %arg1, %c0_i32 : i32, i32, i32
  }
  func.func @transform_1(%arg0: i32, %arg1: i32) -> (i32, i32, i32) {
    %c0_i32 = arith.constant 0 : i32
    %c0_i32_0 = arith.constant 0 : i32
    %c0_i32_1 = arith.constant 0 : i32
    return %arg0, %c0_i32, %c0_i32_0 : i32, i32, i32
  }
  func.func @transform_2(%arg0: i32, %arg1: i32) -> (i32, i32, i32) {
    %c0_i32 = arith.constant 0 : i32
    %c0_i32_0 = arith.constant 0 : i32
    %c0_i32_1 = arith.constant 0 : i32
    return %arg0, %c0_i32, %c0_i32_0 : i32, i32, i32
  }
  func.func @transform_3(%arg0: i32, %arg1: i32) -> (i32, i32, i32, i32) {
    %c0_i32 = arith.constant 0 : i32
    %c0_i32_0 = arith.constant 0 : i32
    %c0_i32_1 = arith.constant 0 : i32
    return %arg0, %c0_i32, %arg1, %c0_i32_0 : i32, i32, i32, i32
  }
  func.func @transform_4(%arg0: i32, %arg1: i32) -> (i32, i32, i32, i32) {
    %c0_i32 = arith.constant 0 : i32
    %c0_i32_0 = arith.constant 0 : i32
    %c0_i32_1 = arith.constant 0 : i32
    %c0_i32_2 = arith.constant 0 : i32
    %c0_i32_3 = arith.constant 0 : i32
    return %c0_i32, %c0_i32_0, %c0_i32_1, %c0_i32_2 : i32, i32, i32, i32
  }
  func.func @transform_5(%arg0: i32, %arg1: i32) -> (i32, i32, i32, i32) {
    %c0_i32 = arith.constant 0 : i32
    %c0_i32_0 = arith.constant 0 : i32
    %c0_i32_1 = arith.constant 0 : i32
    %c0_i32_2 = arith.constant 0 : i32
    %c0_i32_3 = arith.constant 0 : i32
    return %c0_i32, %c0_i32_0, %c0_i32_1, %c0_i32_2 : i32, i32, i32, i32
  }
  func.func @transform_6(%arg0: i32, %arg1: i32) -> (i32, i32, i32) {
    %c0_i32 = arith.constant 0 : i32
    %c0_i32_0 = arith.constant 0 : i32
    %c0_i32_1 = arith.constant 0 : i32
    %c0_i32_2 = arith.constant 0 : i32
    return %c0_i32, %c0_i32_0, %c0_i32_1 : i32, i32, i32
  }
  func.func @transform_7(%arg0: i32, %arg1: i32) -> (i32, i32) {
    %c0_i32 = arith.constant 0 : i32
    %c0_i32_0 = arith.constant 0 : i32
    %c0_i32_1 = arith.constant 0 : i32
    return %c0_i32, %c0_i32_0 : i32, i32
  }
  func.func @transform_8(%arg0: i32, %arg1: i32) -> (i32, i32, i32) {
    %c0_i32 = arith.constant 0 : i32
    %c0_i32_0 = arith.constant 0 : i32
    return %arg0, %arg1, %c0_i32 : i32, i32, i32
  }
}

</mosaic_0001>

<bundles_post_ra>
// kernel: tpu_custom_call.1
= control target key start
LH: loop header
LB: loop body
LE: loop exit
PB: predicated region body
PF: predicated region fallthrough
CT: control target
= control target key end

     0   :  { %13 = vsyncpa [#allocation3], 0  ;;  %s2889_s0 = inlined_call_operand.vmem [shape: f32[2,8,32], index: 0, kind: input, shape index: {}]   ;;  %s2890_s1 = inlined_call_operand.vmem [shape: f32[2,8,32], index: 1, kind: input, shape index: {}]   ;;  %s2891_s2 = inlined_call_operand.vmem [shape: f32[2,8,32], index: 2, kind: input, shape index: {}]   ;;  %s2892_s3 = inlined_call_operand.vmem [shape: s32[2,1,8,8], index: 3, kind: input, shape index: {}]   ;;  %s2893_s4 = inlined_call_operand.vmem [shape: bf16[3,4,32,8], index: 4, kind: input, shape index: {}]   ;;  %s2894_s5 = inlined_call_operand.vmem [shape: f32[3,4,1,8], index: 5, kind: input, shape index: {}]   ;;  %s2895_s6 = inlined_call_operand.vmem [shape: bf16[4,8,32], index: 6, kind: input, shape index: {}]   ;;  %s2896_s7 = inlined_call_operand.vmem [shape: f32[1,32], index: 7, kind: input, shape index: {}]   ;;  %s2897_s8 = inlined_call_operand.hbm [shape: f32[2,8,32], index: 8, kind: output, shape index: {}]  }
   0x1   :  { %15 = vsyncpa [#allocation3 + $0x1], 0  ;;  %s2499_s27 = smov 0   ;;  %s2501_s28 = smov 0  }
   0x2   :  { %s2503_s29 = smov 0   ;;  %s2505_s30 = smov 0  }
   0x3   :  { %s2507_s9 = smov 0   ;;  %s2509_s10 = smov 0  }
   0x4 LB: > { %s1931_s11 = sadd.s32 4294967295, %s2449_s10   ;;  %s1932_s12 = sadd.s32 4294967294, %s2449_s10   ;;  %s2449_s10 = sphi %s2509_s10, %s21_s10   ;;  %s2445_s9 = sphi %s2507_s9, %s2904_s9   ;;  %s2441_s30 = sphi %s2505_s30, %s2903_s30   ;;  %s2437_s29 = sphi %s2503_s29, %s2902_s29   ;;  %s2433_s28 = sphi %s2501_s28, %s2901_s28   ;;  %s2429_s27 = sphi %s2499_s27, %s2900_s27  }
   0x5   : > { %s33_s13 = sadd.s32 1, %s2445_s9  ;;  %s234_s14 = sadd.s32 1, %s2437_s29 }
   0x6   : > { %p35_p0 = scmp.ge.s32.totalorder %s33_s13, 2  ;;  %p244_p1 = scmp.ne.s32.totalorder %s2437_s29, %s2433_s28 }
   0x7   : > { %p245_p2 = scmp.eq.s32.totalorder %s1931_s11, 1  ;;  %p250_p3 = scmp.ne.s32.totalorder %s2433_s28, %s2429_s27 }
   0x8   : > { %s2906_s13 = smov (%p35_p0, %s33_s13), 0  ;;  %p251_p5 = scmp.eq.s32.totalorder %s1932_s12, 1 }
   0x9   : > { %p2539_p4 = por %p245_p2, %p244_p1  ;;  %s229_s16 = ssub.s32 %s2445_s9, %s2906_s13 }
   0xa   : > { %p1935_p6 = scmp.ge.s32.totalorder %s2449_s10, 1  ;;  %p232_p7 = scmp.eq.s32.totalorder %s229_s16, 0 }
   0xb   : > { %p2546_p8 = por %p251_p5, %p250_p3  ;;  %p315_p9 = scmp.lt.s32.totalorder %s2449_s10, 3 }
   0xc   : > { %s2552_s18 = scalar_select %p232_p7, %s2437_s29, %s234_s14  }
   0xd   : > { %p316_p10 = pnand %p1935_p6, %p315_p9 }
   0xe   : > { %v2331_v0 = vld [vmem:[%s2893_s4] sm:$0xff] (!%p316_p10)   ;;  %v2451_v1 = vmov (!%p316_p10), 0.0   ;;  %v2332_v2 = vld [vmem:[%s2893_s4 + $0x10] sm:$0xff] (!%p316_p10)   ;;  %v2333_v3 = vld [vmem:[%s2893_s4 + $0x8] sm:$0xff] (!%p316_p10)   ;;  %vm2452_vm0 = vmmov (!%p316_p10), 0   ;;  %p366_p11 = scmp.lt.s32.totalorder (!%p316_p10), %s2441_s30, 1 }
   0xf   : > { %319 = sbr.rel (%p316_p10) target bundleno = 1256 (0x4e8), region = 52  ;;  %2106 = vmatprep.subr.bf16.mxu0 (!%p316_p10), %v2451_v1  ;;  %2114 = vmatprep.subr.bf16.mxu1 (!%p316_p10), %v2451_v1  ;;  %v2334_v4 = vld [vmem:[%s2893_s4 + $0x18] sm:$0xff] (!%p316_p10)   ;;  %v2335_v5 = vld [vmem:[%s2893_s4 + $0x20] sm:$0xff] (!%p316_p10)   ;;  %v2336_v6 = vld [vmem:[%s2893_s4 + $0x30] sm:$0xff] (!%p316_p10)   ;;  %vm495_vm1 = vcmask (!%p316_p10), 261120   ;;  %vm1180_vm2 = vcmask (!%p316_p10), 64512  }
  0x10   : > { %2107 = vmatpush3.bf16.msra.mxu0 (!%p316_p10), %v2331_v0  ;;  %2110 = vmatprep.mubr.msk.bf16.mxu0 (!%p316_p10), %vm2452_vm0, %v2451_v1  ;;  %v2337_v9 = vld [vmem:[%s2893_s4 + $0x28] sm:$0xff] (!%p316_p10)   ;;  %v2338_v10 = vld [vmem:[%s2893_s4 + $0x38] sm:$0xff] (!%p316_p10)   ;;  %v2339_v11 = vld [vmem:[%s2893_s4 + $0x40] sm:$0xff] (!%p316_p10)   ;;  %vm1416_vm3 = vcmask (!%p316_p10), 1043456   ;;  %s2043_s26 = sshll.u32 (!%p316_p10), %s2441_s30, 7 }
  0x11   : > { %2115 = vmatpush3.bf16.msra.mxu1 (!%p316_p10), %v2332_v2  ;;  %2108 = vmatprep.subr.bf16.mxu0 (!%p316_p10), %v2451_v1  ;;  %v2340_v12 = vld [vmem:[%s2893_s4 + $0x50] sm:$0xff] (!%p316_p10)   ;;  %v2341_v13 = vld [vmem:[%s2893_s4 + $0x48] sm:$0xff] (!%p316_p10)   ;;  %v2342_v14 = vld [vmem:[%s2893_s4 + $0x58] sm:$0xff] (!%p316_p10)   ;;  %s2841_s20 = scalar_lea.hbm (!%p316_p10), %s2897_s8, %s2043_s26 }
  0x12   : > { %2116 = vmatprep.subr.bf16.mxu1 (!%p316_p10), %v2451_v1  ;;  %2118 = vmatprep.mubr.msk.bf16.mxu1 (!%p316_p10), %vm2452_vm0, %v2451_v1  ;;  %v2343_v17 = vld [vmem:[%s2893_s4 + $0x60] sm:$0xff] (!%p316_p10)   ;;  %v2344_v18 = vld [vmem:[%s2893_s4 + $0x70] sm:$0xff] (!%p316_p10)   ;;  %v2345_v19 = vld [vmem:[%s2893_s4 + $0x68] sm:$0xff] (!%p316_p10)  }
  0x13   : > { %v2346_v20 = vld [vmem:[%s2893_s4 + $0x78] sm:$0xff] (!%p316_p10)   ;;  %v2347_v21 = vld [vmem:[%s2893_s4 + $0x80] sm:$0xff] (!%p316_p10)   ;;  %v2348_v22 = vld [vmem:[%s2893_s4 + $0x90] sm:$0xff] (!%p316_p10)  }
  0x14   : > { %2109 = vmatpush3.bf16.msra.mxu0 (!%p316_p10), %v2333_v3  ;;  %v2349_v23 = vld [vmem:[%s2893_s4 + $0x88] sm:$0xff] (!%p316_p10)   ;;  %v2350_v24 = vld [vmem:[%s2893_s4 + $0x98] sm:$0xff] (!%p316_p10)   ;;  %v2351_v27 = vld [vmem:[%s2893_s4 + $0xa0] sm:$0xff] (!%p316_p10)  }
  0x15   : > { %2117 = vmatpush3.bf16.msra.mxu1 (!%p316_p10), %v2334_v4  ;;  %2122 = vmatprep.subr.bf16.mxu0 (!%p316_p10), %v2451_v1  ;;  %v2352_v28 = vld [vmem:[%s2893_s4 + $0xb0] sm:$0xff] (!%p316_p10)   ;;  %v2353_v29 = vld [vmem:[%s2893_s4 + $0xa8] sm:$0xff] (!%p316_p10)   ;;  %v2354_v30 = vld [vmem:[%s2893_s4 + $0xb8] sm:$0xff] (!%p316_p10)  }
  0x16   : > { %s367_s11 = scalar_select %p366_p11, %s2441_s30, 1  ;;  %2130 = vmatprep.subr.bf16.mxu1 %v2451_v1  ;;  %v1997_v47 = vld [vmem:[%s2894_s5 + $0x4] ss:$0 sm:$0xff]  ;;  %v1998_v48 = vld [vmem:[%s2894_s5 + $0x5] ss:$0 sm:$0xff] }
  0x17   : > { %v1981_v61 = vld [vmem:[%s2894_s5] ss:$0 sm:$0xff]  ;;  %v1982_v62 = vld [vmem:[%s2894_s5 + $0x1] ss:$0 sm:$0xff]  ;;  %v1999_v2 = vld [vmem:[%s2894_s5 + $0x6] ss:$0 sm:$0xff] }
  0x18   : > { %s2576_s12 = sshll.u32 %s367_s11, 3  ;;  %v2000_v3 = vld [vmem:[%s2894_s5 + $0x7] ss:$0 sm:$0xff] }
  0x19   : > { %s372_s21 = scalar_lea.vmem %s2889_s0, %s2576_s12  ;;  %s380_s22 = scalar_lea.vmem %s2891_s2, %s2576_s12 }
  0x1a   : > { %v389_v7 = vld [vmem:[%s372_s21] sm:$0xff]  ;;  %s376_s21 = scalar_lea.vmem %s2890_s1, %s2576_s12 }
  0x1b   : > { %v390_v8 = vpack.c.bf16 %v389_v7, %v389_v7  ;;  %v391_v15 = vld [vmem:[%s376_s21] sm:$0xff] }
  0x1c   : > { %v392_v16 = vpack.c.bf16 %v391_v15, %v391_v15  ;;  %v393_v25 = vld [vmem:[%s380_s22] sm:$0xff]  ;;  %s387_s22 = scalar_lea.vmem %s2892_s3, %s2576_s12  ;;  %s363_s12 = sand.u32 1, %s2433_s28  }
  0x1d   : > { %2111 = vmatmul.mubr.msk.bf16.vlgmr.msra.gmra.mrb[0].mxu0 %vm495_vm1, %v390_v8  ;;  %2119 = vmatmul.mubr.msk.bf16.vlgmr.msra.gmra.mrb[0].mxu1 %vm495_vm1, %v390_v8  ;;  %v394_v26 = vpack.c.bf16 %v393_v25, %v393_v25  ;;  %s1936_s23 = sshll.u32 %s363_s12, 3  ;;  %s1807_s21 = scalar_lea.sflag [#allocation3], %s363_s12 }
  0x1e   : > { %2123 = vmatpush3.bf16.msra.mxu0 %v2335_v5  ;;  %2131 = vmatpush3.bf16.msra.mxu1 %v2336_v6  ;;  %s365_s11 = scalar_lea.vmem [#allocation2], %s1936_s23 }
  0x1f   : > { %2124 = vmatprep.subr.bf16.mxu0 %v2451_v1  ;;  %2132 = vmatprep.subr.bf16.mxu1 %v2451_v1  ;;  %s1821_s14 = sshll.u32 %s365_s11, 4  ;;  %s2843_s14 = int_to_ptr.vmem [resolvable:$true] %s1821_s14 }
  0x20   : > { %2126 = vmatprep.mubr.msk.bf16.mxu0 %vm2452_vm0, %v2451_v1  ;;  %2134 = vmatprep.mubr.msk.bf16.mxu1 %vm2452_vm0, %v2451_v1  ;;  %s2371_s30 = scalar_lea.vmem %s2843_s14, 128 }
  0x21   : > { %p2372_p12 = scmp.ne.s32.totalorder %s2843_s14, %s2371_s30 }
  0x22   : > { %2125 = vmatpush3.bf16.msra.mxu0 %v2337_v9  ;;  %2133 = vmatpush3.bf16.msra.mxu1 %v2338_v10 }
  0x23   : > { %2138 = vmatprep.subr.bf16.mxu0 %v2451_v1  ;;  %2146 = vmatprep.subr.bf16.mxu1 %v2451_v1  ;;  %p2373_p13 = pnand %p2372_p12, %p2539_p4 }
  0x25   : > { %2127 = vmatmul.mubr.msk.bf16.vlgmr.msra.gmra.mrb[4].mxu0 %vm495_vm1, %v390_v8  ;;  %2135 = vmatmul.mubr.msk.bf16.vlgmr.msra.gmra.mrb[4].mxu1 %vm495_vm1, %v390_v8  ;;  %p2374_p0 = pneg %p2373_p13 }
  0x26   : > { %2139 = vmatpush3.bf16.msra.mxu0 %v2339_v11  ;;  %2147 = vmatpush3.bf16.msra.mxu1 %v2340_v12 }
  0x27   : > { %2140 = vmatprep.subr.bf16.mxu0 %v2451_v1  ;;  %2148 = vmatprep.subr.bf16.mxu1 %v2451_v1 }
  0x28   : > { %2142 = vmatprep.mubr.msk.bf16.mxu0 %vm2452_vm0, %v2451_v1  ;;  %2150 = vmatprep.mubr.msk.bf16.mxu1 %vm2452_vm0, %v2451_v1 }
  0x2a   : > { %2141 = vmatpush3.bf16.msra.mxu0 %v2341_v13  ;;  %2149 = vmatpush3.bf16.msra.mxu1 %v2342_v14 }
  0x2b   : > { %2154 = vmatprep.subr.bf16.mxu0 %v2451_v1  ;;  %2162 = vmatprep.subr.bf16.mxu1 %v2451_v1 }
  0x2d   : > { %2143 = vmatmul.mubr.msk.bf16.vlgmr.msra.gmra.mrb[8].mxu0 %vm495_vm1, %v392_v16  ;;  %2151 = vmatmul.mubr.msk.bf16.vlgmr.msra.gmra.mrb[8].mxu1 %vm495_vm1, %v392_v16 }
  0x2e   : > { %2155 = vmatpush3.bf16.msra.mxu0 %v2343_v17  ;;  %2163 = vmatpush3.bf16.msra.mxu1 %v2344_v18 }
  0x2f   : > { %2156 = vmatprep.subr.bf16.mxu0 %v2451_v1  ;;  %2164 = vmatprep.subr.bf16.mxu1 %v2451_v1 }
  0x30   : > { %2158 = vmatprep.mubr.msk.bf16.mxu0 %vm2452_vm0, %v2451_v1  ;;  %2166 = vmatprep.mubr.msk.bf16.mxu1 %vm2452_vm0, %v2451_v1 }
  0x32   : > { %2157 = vmatpush3.bf16.msra.mxu0 %v2345_v19  ;;  %2165 = vmatpush3.bf16.msra.mxu1 %v2346_v20  ;;  %v1983_v20 = vld [vmem:[%s2894_s5 + $0x2] ss:$0 sm:$0xff] }
  0x33   : > { %2170 = vmatprep.subr.bf16.mxu0 %v2451_v1  ;;  %2178 = vmatprep.subr.bf16.mxu1 %v2451_v1 }
  0x35   : > { %2159 = vmatmul.mubr.msk.bf16.vlgmr.msra.gmra.mrb[12].mxu0 %vm495_vm1, %v392_v16  ;;  %2167 = vmatmul.mubr.msk.bf16.vlgmr.msra.gmra.mrb[12].mxu1 %vm495_vm1, %v392_v16 }
  0x36   : > { %2171 = vmatpush3.bf16.msra.mxu0 %v2347_v21  ;;  %2174 = vmatprep.mubr.msk.bf16.mxu0 %vm2452_vm0, %v2451_v1  ;;  %v1984_v21 = vld [vmem:[%s2894_s5 + $0x3] ss:$0 sm:$0xff] }
  0x37   : > { %2172 = vmatprep.subr.bf16.mxu0 %v2451_v1  ;;  %2182 = vmatprep.mubr.msk.bf16.mxu1 %vm2452_vm0, %v2451_v1 }
  0x38   : > { %2179 = vmatpush3.bf16.msra.mxu1 %v2348_v22 }
  0x39   : > { %2180 = vmatprep.subr.bf16.mxu1 %v2451_v1 }
  0x3a   : > { %2173 = vmatpush3.bf16.msra.mxu0 %v2349_v23 }
  0x3b   : > { %2186 = vmatprep.subr.bf16.mxu0 %v2451_v1 }
  0x3c   : > { %2181 = vmatpush3.bf16.msra.mxu1 %v2350_v24 }
  0x3d   : > { %2175 = vmatmul.mubr.msk.bf16.vlgmr.msra.gmra.mrb[16].mxu0 %vm495_vm1, %v394_v26  ;;  %2194 = vmatprep.subr.bf16.mxu1 %v2451_v1 }
  0x3e   : > { %2190 = vmatprep.mubr.msk.bf16.mxu0 %vm2452_vm0, %v2451_v1  ;;  %2187 = vmatpush3.bf16.msra.mxu0 %v2351_v27 }
  0x3f   : > { %2183 = vmatmul.mubr.msk.bf16.vlgmr.msra.gmra.mrb[16].mxu1 %vm495_vm1, %v394_v26  ;;  %2188 = vmatprep.subr.bf16.mxu0 %v2451_v1 }
  0x40   : > { %2195 = vmatpush3.bf16.msra.mxu1 %v2352_v28  ;;  %2198 = vmatprep.mubr.msk.bf16.mxu1 %vm2452_vm0, %v2451_v1  ;;  %v2013_v28 = vld [vmem:[%s2894_s5 + $0x8] ss:$0 sm:$0xff] }
  0x41   : > { %2196 = vmatprep.subr.bf16.mxu1 %v2451_v1 }
  0x42   : > { %2189 = vmatpush3.bf16.msra.mxu0 %v2353_v29 }
  0x43   : > { %2202 = vmatprep.subr.bf16.mxu0 %v2451_v1 }
  0x44   : > { %2197 = vmatpush3.bf16.msra.mxu1 %v2354_v30  ;;  %v2014_v30 = vld [vmem:[%s2894_s5 + $0x9] ss:$0 sm:$0xff] }
  0x45   : > { %2208 = vmatprep.subr.bf16.mxu1 %v2451_v1  ;;  %2191 = vmatmul.mubr.msk.bf16.vlgmr.msra.gmra.mrb[20].mxu0 %vm495_vm1, %v394_v26 }
  0x46   : > { %2204 = vmatprep.mubr.msk.bf16.mxu0 %vm2452_vm0, %v2451_v1 }
  0x47   : > { %2199 = vmatmul.mubr.msk.bf16.vlgmr.msra.gmra.mrb[20].mxu1 %vm495_vm1, %v394_v26 }
  0x48   : > { %2210 = vmatprep.mubr.msk.bf16.mxu1 %vm2452_vm0, %v2451_v1 }
  0xf0   : > { %v533_v31 = vpop.f32.mrb[0].mxu0  ;;  %v585_v32 = vpop.f32.mrb[0].mxu1 }
  0xf1   : > { %v2112_v33 = vpop.f32.mrb[1].mxu0  ;;  %v2120_v34 = vpop.f32.mrb[1].mxu1  ;;  %v534_v4 = vadd.f32 %v1981_v61, %v533_v31  ;;  %v586_v5 = vadd.f32 %v1982_v62, %v585_v32 }
  0xf2   : > { %v536_v35 = vpop.f32.mrb[2].mxu0  ;;  %v588_v36 = vpop.f32.mrb[2].mxu1 }
  0xf3   : > { %v2113_v37 = vpop.f32.mrb[3].mxu0  ;;  %v2121_v38 = vpop.f32.mrb[3].mxu1  ;;  %v695_v14 = vpack.c.bf16 %v534_v4, %v534_v4  ;;  %v696_v15 = vpack.c.bf16 %v586_v5, %v586_v5 }
  0xf8   : > { %v637_v39 = vpop.f32.mrb[4].mxu0  ;;  %v689_v40 = vpop.f32.mrb[4].mxu1 }
  0xf9   : > { %v2128_v41 = vpop.f32.mrb[5].mxu0  ;;  %v2136_v42 = vpop.f32.mrb[5].mxu1  ;;  %v638_v24 = vadd.f32 %v1983_v20, %v637_v39  ;;  %v690_v25 = vadd.f32 %v1984_v21, %v689_v40 }
  0xfa   : > { %v640_v43 = vpop.f32.mrb[6].mxu0  ;;  %v692_v44 = vpop.f32.mrb[6].mxu1 }
  0xfb   : > { %v2129_v45 = vpop.f32.mrb[7].mxu0  ;;  %v2137_v46 = vpop.f32.mrb[7].mxu1  ;;  %v697_v26 = vpack.c.bf16 %v638_v24, %v638_v24  ;;  %v698_v27 = vpack.c.bf16 %v690_v25, %v690_v25 }
 0x100   : > { %v772_v49 = vpop.f32.mrb[8].mxu0  ;;  %v824_v50 = vpop.f32.mrb[8].mxu1 }
 0x101   : > { %v773_v51 = vadd.f32 %v1997_v47, %v772_v49  ;;  %v825_v52 = vadd.f32 %v1998_v48, %v824_v50  ;;  %v2144_v53 = vpop.f32.mrb[9].mxu0  ;;  %v2152_v54 = vpop.f32.mrb[9].mxu1 }
 0x102   : > { %v775_v55 = vpop.f32.mrb[10].mxu0  ;;  %v827_v56 = vpop.f32.mrb[10].mxu1 }
 0x103   : > { %v934_v57 = vpack.c.bf16 %v773_v51, %v773_v51  ;;  %v935_v58 = vpack.c.bf16 %v825_v52, %v825_v52  ;;  %v2145_v59 = vpop.f32.mrb[11].mxu0  ;;  %v2153_v60 = vpop.f32.mrb[11].mxu1  ;;  %v1177_v52 = vld [vmem:[%s387_s22] sm:$0xff]  ;;  %s2453_s22 = smov [#allocation2]  }
 0x104   : > { %vm1178_vm4 = vcmp.eq.s32.totalorder %v1177_v52, 0  ;;  %s2375_s23 = sshll.u32 %s2453_s22, 4  ;;  %s2376_s23 = int_to_ptr.vmem [resolvable:$false] %s2375_s23 }
 0x105   : > { %v1185_v63 = vsel %vm1180_vm2, %v934_v57, 0  ;;  %v1231_v0 = vsel %vm1180_vm2, %v935_v58, 0  ;;  %v1179_v53 = vsel %vm1178_vm4, -1e+09, %v2451_v1  ;;  %s2377_s24 = scalar_lea.vmem %s2376_s23, 256  ;;  %p2378_p1 = scmp.lt.s32.totalorder %s2843_s14, %s2376_s23 }
 0x106   : > { %2203 = vmatpush3.bf16.xpose.msra.mxu0 %v1185_v63  ;;  %2209 = vmatpush3.bf16.xpose.msra.mxu1 %v1231_v0  ;;  %p2379_p2 = scmp.lt.s32.totalorder %s2377_s24, %s2371_s30 }
 0x107   : > { %2214 = vmatprep.subr.bf16.mxu0 %v2451_v1  ;;  %2220 = vmatprep.subr.bf16.mxu1 %v2451_v1 }
 0x108   : > { %v876_v6 = vpop.f32.mrb[12].mxu0  ;;  %v928_v7 = vpop.f32.mrb[12].mxu1  ;;  %p2380_p3 = por %p2379_p2, %p2378_p1 }
 0x109   : > { %v877_v8 = vadd.f32 %v1999_v2, %v876_v6  ;;  %v929_v9 = vadd.f32 %v2000_v3, %v928_v7  ;;  %v2160_v10 = vpop.f32.mrb[13].mxu0  ;;  %v2168_v11 = vpop.f32.mrb[13].mxu1 }
 0x10a   : > { %v879_v12 = vpop.f32.mrb[14].mxu0  ;;  %v931_v13 = vpop.f32.mrb[14].mxu1  ;;  %p2381_p5 = pnand %p2380_p3, %p2374_p0 }
 0x10b   : > { %v936_v16 = vpack.c.bf16 %v877_v8, %v877_v8  ;;  %v937_v17 = vpack.c.bf16 %v929_v9, %v929_v9  ;;  %v2161_v18 = vpop.f32.mrb[15].mxu0  ;;  %v2169_v19 = vpop.f32.mrb[15].mxu1 }
 0x10d   : > { %v1277_v22 = vsel %vm1180_vm2, %v936_v16, 0  ;;  %v1323_v23 = vsel %vm1180_vm2, %v937_v17, 0  ;;  %2205 = vmatmul.mubr.msk.bf16.vlgmr.msra.gmra.mrb[24].mxu0 %vm1180_vm2, %v695_v14  ;;  %2211 = vmatmul.mubr.msk.bf16.vlgmr.msra.gmra.mrb[24].mxu1 %vm1180_vm2, %v696_v15 }
 0x10e   : > { %2215 = vmatpush3.bf16.xpose.msra.mxu0 %v1277_v22  ;;  %2221 = vmatpush3.bf16.xpose.msra.mxu1 %v1323_v23 }
 0x10f   : > { %2216 = vmatprep.mubr.msk.bf16.mxu0 %vm2452_vm0, %v2451_v1  ;;  %2222 = vmatprep.mubr.msk.bf16.mxu1 %vm2452_vm0, %v2451_v1 }
 0x110   : > { %2226 = vmatprep.subr.bf16.mxu0 %v2451_v1  ;;  %2232 = vmatprep.subr.bf16.mxu1 %v2451_v1  ;;  %v1011_v29 = vpop.f32.mrb[16].mxu0 }
 0x111   : > { %v1012_v31 = vadd.f32 %v2013_v28, %v1011_v29  ;;  %v2176_v32 = vpop.f32.mrb[17].mxu0 }
 0x112   : > { %v1014_v33 = vpop.f32.mrb[18].mxu0  ;;  %v1063_v34 = vpop.f32.mrb[16].mxu1 }
 0x113   : > { %v1173_v35 = vpack.c.bf16 %v1012_v31, %v1012_v31  ;;  %v2177_v36 = vpop.f32.mrb[19].mxu0  ;;  %v1064_v37 = vadd.f32 %v2014_v30, %v1063_v34  ;;  %v2184_v38 = vpop.f32.mrb[17].mxu1 }
 0x114   : > { %v1066_v39 = vpop.f32.mrb[18].mxu1 }
 0x115   : > { %2217 = vmatmul.mubr.msk.bf16.vlgmr.msra.gmra.mrb[28].mxu0 %vm1180_vm2, %v697_v26  ;;  %2223 = vmatmul.mubr.msk.bf16.vlgmr.msra.gmra.mrb[28].mxu1 %vm1180_vm2, %v698_v27  ;;  %v1418_v40 = vsel %vm1416_vm3, %v1173_v35, 0  ;;  %v1174_v41 = vpack.c.bf16 %v1064_v37, %v1064_v37  ;;  %v2185_v42 = vpop.f32.mrb[19].mxu1  ;;  %v2015_v37 = vld [vmem:[%s2894_s5 + $0xa] ss:$0 sm:$0xff] }
 0x116   : > { %2228 = vmatprep.mubr.msk.bf16.mxu0 %vm2452_vm0, %v2451_v1  ;;  %2234 = vmatprep.mubr.msk.bf16.mxu1 %vm2452_vm0, %v2451_v1 }
 0x117   : > { %2227 = vmatpush3.bf16.msra.mxu0 %v1418_v40  ;;  %v1464_v43 = vsel %vm1416_vm3, %v1174_v41, 0  ;;  %v2016_v40 = vld [vmem:[%s2894_s5 + $0xb] ss:$0 sm:$0xff] }
 0x118   : > { %2238 = vmatprep.subr.bf16.mxu0 %v2451_v1  ;;  %2233 = vmatpush3.bf16.msra.mxu1 %v1464_v43  ;;  %v2762_v44 = vpop.f32.mrb[20].mxu0 }
 0x119   : > { %2244 = vmatprep.subr.bf16.mxu1 %v2451_v1  ;;  %v2192_v46 = vpop.f32.mrb[21].mxu0  ;;  %v1116_v38 = vadd.f32 %v2015_v37, %v2762_v44 }
 0x11a   : > { %v2764_v45 = vpop.f32.mrb[20].mxu1  ;;  %v1118_v48 = vpop.f32.mrb[22].mxu0 }
 0x11b   : > { %v2200_v47 = vpop.f32.mrb[21].mxu1  ;;  %v2193_v50 = vpop.f32.mrb[23].mxu0  ;;  %v1175_v42 = vpack.c.bf16 %v1116_v38, %v1116_v38  ;;  %v1168_v43 = vadd.f32 %v2016_v40, %v2764_v45  ;;  %v1602_v45 = vld [vmem:[%s2895_s6] sm:$0xf] }
 0x11c   : > { %v1170_v49 = vpop.f32.mrb[22].mxu1 }
 0x11d   : > { %v2201_v51 = vpop.f32.mrb[23].mxu1  ;;  %v1510_v50 = vsel %vm1416_vm3, %v1175_v42, 0  ;;  %v2041_v42 = vld [vmem:[%s2896_s7] ss:$0 sm:$0xff] }
 0x11e   : > { %v1176_v51 = vpack.c.bf16 %v1168_v43, %v1168_v43 }
 0x1e0   : > { %v1221_v54 = vpop.f32.mrb[24].mxu0  ;;  %v1267_v55 = vpop.f32.mrb[24].mxu1 }
 0x1e1   : > { %v1222_v56 = vadd.f32 %v1221_v54, %v1179_v53  ;;  %v2206_v57 = vpop.f32.mrb[25].mxu0  ;;  %v2212_v58 = vpop.f32.mrb[25].mxu1  ;;  %v1268_v61 = vadd.f32 %v1267_v55, %v1179_v53  ;;  %v1556_v54 = vsel %vm1416_vm3, %v1176_v51, 0 }
 0x1e2   : > { %v1224_v59 = vpop.f32.mrb[26].mxu0  ;;  %v1270_v60 = vpop.f32.mrb[26].mxu1  ;;  %v1610_v57 = vsel %vm1416_vm3, %v1602_v45, 0 }
 0x1e3   : > { %v2207_v62 = vpop.f32.mrb[27].mxu0  ;;  %v2213_v63 = vpop.f32.mrb[27].mxu1  ;;  %v1365_v0 = vsel %vm1180_vm2, %v1222_v56, -inf  ;;  %v1368_v2 = vsel %vm1180_vm2, %v1268_v61, -inf }
 0x1e4   : > { %1366 = vmax.xlane.f32.xlu0 %v1365_v0  ;;  %v1604_v63 = vld [vmem:[%s2895_s6 + $0x8] sm:$0xf] }
 0x1e8   : > { %v1359_v3 = vpop.f32.mrb[28].mxu1  ;;  %1369 = vmax.xlane.f32.xlu0 %v1368_v2  ;;  %v1313_v4 = vpop.f32.mrb[28].mxu0 }
 0x1e9   : > { %v1314_v5 = vadd.f32 %v1313_v4, %v1179_v53  ;;  %v2218_v6 = vpop.f32.mrb[29].mxu0  ;;  %v2224_v7 = vpop.f32.mrb[29].mxu1  ;;  %v1360_v10 = vadd.f32 %v1359_v3, %v1179_v53  ;;  %v1702_v4 = vsel %vm1416_vm3, %v1604_v63, 0 }
 0x1ea   : > { %v1316_v8 = vpop.f32.mrb[30].mxu0  ;;  %v1362_v9 = vpop.f32.mrb[30].mxu1  ;;  %v1605_v6 = vld [vmem:[%s2895_s6 + $0xc] sm:$0xf] }
 0x1eb   : > { %v2219_v11 = vpop.f32.mrb[31].mxu0  ;;  %v2225_v12 = vpop.f32.mrb[31].mxu1  ;;  %v1371_v13 = vsel %vm1180_vm2, %v1314_v5, -inf  ;;  %v1374_v14 = vsel %vm1180_vm2, %v1360_v10, -inf }
 0x1ec   : > { %1372 = vmax.xlane.f32.xlu1 %v1371_v13  ;;  %v1748_v11 = vsel %vm1416_vm3, %v1605_v6, 0 }
 0x1f0   : > { %1375 = vmax.xlane.f32.xlu1 %v1374_v14 }
 0x271   : > { %v1367_v15 = vpop.xlane.xlu0 %1366 }
 0x272   : > { %v1377_v16 = vsub.f32 %v1222_v56, %v1367_v15 }
 0x274   : > { %v1381_v17 = vmul.f32 1.442695, %v1377_v16 }
 0x275   : > { %v1370_v18 = vpop.xlane.xlu0 %1369 }
 0x276   : > { %2355 = vpow2.f32 %v1381_v17  ;;  %v1378_v19 = vsub.f32 %v1268_v61, %v1370_v18  ;;  %v1603_v61 = vld [vmem:[%s2895_s6 + $0x4] sm:$0xf] }
 0x277   : > { %v1656_v62 = vsel %vm1416_vm3, %v1603_v61, 0 }
 0x278   : > { %v1383_v20 = vmul.f32 1.442695, %v1378_v19 }
 0x279   : > { %v1373_v21 = vpop.xlane.xlu1 %1372 }
 0x27a   : > { %2357 = vpow2.f32 %v1383_v20  ;;  %v1379_v22 = vsub.f32 %v1314_v5, %v1373_v21 }
 0x27c   : > { %v1385_v23 = vmul.f32 1.442695, %v1379_v22 }
 0x27d   : > { %v1376_v24 = vpop.xlane.xlu1 %1375 }
 0x27e   : > { %2359 = vpow2.f32 %v1385_v23  ;;  %v1380_v25 = vsub.f32 %v1360_v10, %v1376_v24 }
 0x280   : > { %v2356_v26 = vpop.eup %2355  ;;  %v1387_v27 = vmul.f32 1.442695, %v1380_v25 }
 0x281   : > { %v1389_v28 = vsel %vm1180_vm2, %v2356_v26, 0.0 }
 0x282   : > { %2361 = vpow2.f32 %v1387_v27  ;;  %1390 = vadd.xlane.f32.xlu0 %v1389_v28 }
 0x284   : > { %v2358_v29 = vpop.eup %2357 }
 0x285   : > { %v1392_v30 = vsel %vm1180_vm2, %v2358_v29, 0.0 }
 0x286   : > { %1393 = vadd.xlane.f32.xlu1 %v1392_v30 }
 0x288   : > { %v2360_v31 = vpop.eup %2359 }
 0x289   : > { %v1395_v32 = vsel %vm1180_vm2, %v2360_v31, 0.0 }
 0x28a   : > { %1396 = vadd.xlane.f32.xlu0 %v1395_v32 }
 0x28c   : > { %v2362_v33 = vpop.eup %2361 }
 0x28d   : > { %v1398_v34 = vsel %vm1180_vm2, %v2362_v33, 0.0 }
 0x28e   : > { %1399 = vadd.xlane.f32.xlu1 %v1398_v34 }
 0x30f   : > { %v1391_v35 = vpop.xlane.xlu0 %1390 }
 0x310   : > { %2363 = vrcp.f32 %v1391_v35 }
 0x313   : > { %v1394_v36 = vpop.xlane.xlu1 %1393 }
 0x314   : > { %2365 = vrcp.f32 %v1394_v36 }
 0x317   : > { %v1397_v39 = vpop.xlane.xlu0 %1396 }
 0x318   : > { %2367 = vrcp.f32 %v1397_v39 }
 0x31a   : > { %v2364_v41 = vpop.eup %2363 }
 0x31b   : > { %v1405_v46 = vmul.f32 %v2364_v41, %v2356_v26  ;;  %v1400_v47 = vpop.xlane.xlu1 %1399 }
 0x31c   : > { %2369 = vrcp.f32 %v1400_v47 }
 0x31d   : > { %v1409_v48 = vpack.c.bf16 %v1405_v46, %v1405_v46 }
 0x31e   : > { %v2366_v49 = vpop.eup %2365 }
 0x31f   : > { %v1406_v52 = vmul.f32 %v2366_v49, %v2358_v29  ;;  %2229 = vmatmul.mubr.msk.bf16.vlgmr.msra.gmra.mrb[32].mxu0 %vm1180_vm2, %v1409_v48 }
 0x320   : > { %2239 = vmatpush3.bf16.msra.mxu0 %v1510_v50  ;;  %2240 = vmatprep.mubr.msk.bf16.mxu0 %vm2452_vm0, %v2451_v1 }
 0x321   : > { %v1410_v44 = vpack.c.bf16 %v1406_v52, %v1406_v52  ;;  %2250 = vmatprep.subr.bf16.mxu0 %v2451_v1 }
 0x322   : > { %v2368_v53 = vpop.eup %2367 }
 0x323   : > { %v1407_v55 = vmul.f32 %v2368_v53, %v2360_v31  ;;  %2235 = vmatmul.mubr.msk.bf16.vlgmr.msra.gmra.mrb[32].mxu1 %vm1180_vm2, %v1410_v44 }
 0x324   : > { %2245 = vmatpush3.bf16.msra.mxu1 %v1556_v54  ;;  %2246 = vmatprep.mubr.msk.bf16.mxu1 %vm2452_vm0, %v2451_v1 }
 0x325   : > { %v1411_v56 = vpack.c.bf16 %v1407_v55, %v1407_v55  ;;  %2256 = vmatprep.subr.bf16.mxu1 %v2451_v1 }
 0x326   : > { %v2370_v58 = vpop.eup %2369 }
 0x327   : > { %v1408_v59 = vmul.f32 %v2370_v58, %v2362_v33  ;;  %2241 = vmatmul.mubr.msk.bf16.vlgmr.msra.gmra.mrb[36].mxu0 %vm1180_vm2, %v1411_v56 }
 0x328   : > { %2251 = vmatpush3.bf16.msra.mxu0 %v1610_v57  ;;  %2252 = vmatprep.mubr.msk.bf16.mxu0 %vm2452_vm0, %v2451_v1 }
 0x329   : > { %v1412_v60 = vpack.c.bf16 %v1408_v59, %v1408_v59  ;;  %2262 = vmatprep.subr.bf16.mxu0 %v2451_v1 }
 0x32b   : > { %2247 = vmatmul.mubr.msk.bf16.vlgmr.msra.gmra.mrb[36].mxu1 %vm1180_vm2, %v1412_v60 }
 0x32c   : > { %2258 = vmatprep.mubr.msk.bf16.mxu1 %vm2452_vm0, %v2451_v1  ;;  %2257 = vmatpush3.bf16.msra.mxu1 %v1656_v62 }
 0x32d   : > { %2268 = vmatprep.subr.bf16.mxu1 %v2451_v1 }
 0x3f2   : > { %v1454_v0 = vpop.f32.mrb[32].mxu0 }
 0x3f3   : > { %v1598_v2 = vpack.c.bf16 %v1454_v0, %v1454_v0  ;;  %v2230_v3 = vpop.f32.mrb[33].mxu0 }
 0x3f4   : > { %v1457_v5 = vpop.f32.mrb[34].mxu0 }
 0x3f5   : > { %v2231_v7 = vpop.f32.mrb[35].mxu0  ;;  %2253 = vmatmul.mubr.msk.bf16.vlgmr.msra.gmra.mrb[40].mxu0 %vm1180_vm2, %v1598_v2 }
 0x3f6   : > { %v1500_v8 = vpop.f32.mrb[32].mxu1  ;;  %2263 = vmatpush3.bf16.msra.mxu0 %v1702_v4  ;;  %2264 = vmatprep.mubr.msk.bf16.mxu0 %vm2452_vm0, %v2451_v1 }
 0x3f7   : > { %v1599_v9 = vpack.c.bf16 %v1500_v8, %v1500_v8  ;;  %v2236_v10 = vpop.f32.mrb[33].mxu1 }
 0x3f8   : > { %v1503_v12 = vpop.f32.mrb[34].mxu1 }
 0x3f9   : > { %v2237_v13 = vpop.f32.mrb[35].mxu1  ;;  %2259 = vmatmul.mubr.msk.bf16.vlgmr.msra.gmra.mrb[40].mxu1 %vm1180_vm2, %v1599_v9 }
 0x3fa   : > { %v1546_v14 = vpop.f32.mrb[36].mxu0  ;;  %2269 = vmatpush3.bf16.msra.mxu1 %v1748_v11  ;;  %2270 = vmatprep.mubr.msk.bf16.mxu1 %vm2452_vm0, %v2451_v1 }
 0x3fb   : > { %v1600_v15 = vpack.c.bf16 %v1546_v14, %v1546_v14  ;;  %v2242_v16 = vpop.f32.mrb[37].mxu0 }
 0x3fc   : > { %v1549_v17 = vpop.f32.mrb[38].mxu0 }
 0x3fd   : > { %v2243_v18 = vpop.f32.mrb[39].mxu0  ;;  %2265 = vmatmul.mubr.msk.bf16.vlgmr.msra.gmra.mrb[44].mxu0 %vm1180_vm2, %v1600_v15 }
 0x3fe   : > { %v1592_v19 = vpop.f32.mrb[36].mxu1 }
 0x3ff   : > { %v1601_v20 = vpack.c.bf16 %v1592_v19, %v1592_v19  ;;  %v2248_v21 = vpop.f32.mrb[37].mxu1 }
 0x400   : > { %v1595_v22 = vpop.f32.mrb[38].mxu1 }
 0x401   : > { %v2249_v23 = vpop.f32.mrb[39].mxu1  ;;  %2271 = vmatmul.mubr.msk.bf16.vlgmr.msra.gmra.mrb[44].mxu1 %vm1180_vm2, %v1601_v20 }
 0x4c8   : > { %v1646_v24 = vpop.f32.mrb[40].mxu0 }
 0x4c9   : > { %v2254_v25 = vpop.f32.mrb[41].mxu0  ;;  %v1790_v1 = vsel %vm495_vm1, %v1646_v24, 0.0 }
 0x4ca   : > { %v1649_v26 = vpop.f32.mrb[42].mxu0 }
 0x4cb   : > { %v2255_v27 = vpop.f32.mrb[43].mxu0 }
 0x4cc   : > { %v1692_v28 = vpop.f32.mrb[40].mxu1 }
 0x4cd   : > { %v1791_v29 = vsel %vm495_vm1, %v1692_v28, 0.0  ;;  %v2260_v30 = vpop.f32.mrb[41].mxu1 }
 0x4ce   : > { %v1792_v31 = vadd.f32 %v1791_v29, %v1790_v1  ;;  %v1695_v32 = vpop.f32.mrb[42].mxu1 }
 0x4cf   : > { %v2261_v33 = vpop.f32.mrb[43].mxu1 }
 0x4d0   : > { %v1738_v34 = vpop.f32.mrb[44].mxu0 }
 0x4d1   : > { %v1793_v35 = vsel %vm495_vm1, %v1738_v34, 0.0  ;;  %v2266_v36 = vpop.f32.mrb[45].mxu0 }
 0x4d2   : > { %v1794_v37 = vadd.f32 %v1793_v35, %v1792_v31  ;;  %v1741_v38 = vpop.f32.mrb[46].mxu0 }
 0x4d3   : > { %v2267_v39 = vpop.f32.mrb[47].mxu0 }
 0x4d4   : > { %v1784_v40 = vpop.f32.mrb[44].mxu1 }
 0x4d5   : > { %v1795_v41 = vsel %vm495_vm1, %v1784_v40, 0.0  ;;  %v2272_v43 = vpop.f32.mrb[45].mxu1 }
 0x4d6   : > { %v1796_v46 = vadd.f32 %v1795_v41, %v1794_v37  ;;  %v1787_v47 = vpop.f32.mrb[46].mxu1 }
 0x4d7   : > { %v2273_v48 = vpop.f32.mrb[47].mxu1 }
 0x4d8   : > { %v1804_v49 = vadd.f32 %v2041_v42, %v1796_v46 }
 0x4da   : > { %1805 = vst.msk [vmem:[%s365_s11] sm:$0xff] %vm495_vm1, %v1804_v49 }
 0x4db   : > { %2384 = shalt.err (!%p2381_p5)
}
 0x4dc   : > { %s2385_s12 = scalar_lea.hbm %s2841_s20, 128  ;;  %s2389_s11 = scalar_lea.hbm %s2897_s8, 256 }
 0x4dd   : > { %p2386_p6 = scmp.ne.s32.totalorder %s2841_s20, %s2385_s12  ;;  %p2390_p10 = scmp.lt.u32.totalorder %s2841_s20, %s2897_s8 }
 0x4de   : > { %p2391_p11 = scmp.lt.u32.totalorder %s2389_s11, %s2385_s12  ;;  %p2393_p13 = scmp.lt.u32.totalorder %s2385_s12, %s2841_s20 }
 0x4df   : > { %p2387_p7 = pnand %p2386_p6, %p2539_p4 }
 0x4e0   : > { %p2392_p12 = por %p2391_p11, %p2390_p10 }
 0x4e1   : > { %p2388_p9 = pneg %p2387_p7 }
 0x4e2   : > { %p2394_p0 = por %p2393_p13, %p2392_p12 }
 0x4e4   : > { %p2395_p1 = pnand %p2394_p0, %p2388_p9 }
 0x4e6   : > { %2398 = shalt.err (!%p2395_p1)
}
 0x4e7   : > { %2274 = dma.vmem_to_hbm [thread:$0]  (%p2539_p4), %s2843_s14, 128, %s2841_s20, %s1807_s21  }
 0x4e8 PF: > { %p2280_p2 = scmp.ge.s32.totalorder %s2449_s10, 2  ;;  %s1833_s30 = sand.u32 1, %s2429_s27  }
 0x4e9   : > { %s1834_s22 = scalar_lea.sflag [#allocation3], %s1833_s30 }
 0x4ea   : > { %p2277_p3 = pnand %p2280_p2, %p2546_p8 }
 0x4ec   : > { %2424 = dma.done.wait (!%p2277_p3), %s1834_s22, 128  }
 0x4ed   : > { %2426 = vsyncadd (!%p2277_p3), %s1834_s22, 4294967168  ;;  %s21_s10 = sadd.s32 1, %s2449_s10   ;;  %s2900_s27 = smov %s2433_s28 }
 0x4ee   : > { %p18_p5 = scmp.ge.s32.totalorder %s21_s10, 4   ;;  %s2901_s28 = smov %s2437_s29 }
 0x4ef   : > { %s2902_s29 = smov %s2552_s18  ;;  %s2903_s30 = smov %s2445_s9 }
 0x4f0   : > { %s2904_s9 = smov %s2906_s13  ;;  %20 = sbr.rel (!%p18_p5) target bundleno = 4 (0x4), region = 100 }
 0x4f7   :  { %1839 = vsyncpa [#allocation3], 1 }
 0x4f8   :  { %1841 = vsyncpa [#allocation3 + $0x1], 1 }

</bundles_post_ra>
